<compile_context>
chip_gen: v5e
topology: v5e:2x2
jax: 0.10.0
libtpu: 0.0.40
codegen_flags: <defaults>
</compile_context>

<pallas_src>
import functools
import math

import jax
import jax.numpy as jnp
from jax.experimental import pallas as pl
from jax.experimental.pallas import tpu as pltpu

LN_EPS = 1e-5                 # PyTorch nn.LayerNorm default
NEG_INF = -1e30               # finite "minus infinity" for key masking


def _round_up(x, m):
    return ((x + m - 1) // m) * m


def _pick_tile(total, want):
    """Largest tile <= want that evenly divides total (128-multiples preferred)."""
    if total <= want:
        return total
    t = (min(want, total) // 128) * 128
    while t >= 128:
        if total % t == 0:
            return t
        t -= 128
    return total


def _heads_per_block(heads, dim_head):
    """Smallest head group whose width is a multiple of 128 lanes."""
    for c in range(1, heads + 1):
        if heads % c == 0 and (c * dim_head) % 128 == 0:
            return c
    # TODO(synk): no head grouping yields a 128-lane-aligned column block
    # (dim_head * heads not a multiple of 128); fall back to all heads per block.
    return heads


def _vmem_limit_bytes():
    """~3/4 of physical VMEM (96 MiB on v5e/v6e, 48 MiB on v7x)."""
    try:
        cap = getattr(pltpu.get_tpu_info(), "vmem_capacity_bytes", None)
        if cap:
            return int(cap) * 3 // 4
    except Exception:
        pass
    return 48 << 20


# ---------------------------------------------------------------------------
# Kernel 1: fused LayerNorm + QKV projection (no bias). grid = (B, seq_tiles)
# ---------------------------------------------------------------------------
def ln_qkv_kernel(x_ref, g_ref, b_ref, w_ref, o_ref):
    x = x_ref[...].astype(jnp.float32)                        # (tseq, D)
    mean = jnp.mean(x, axis=-1, keepdims=True)
    var = jnp.mean(jnp.square(x - mean), axis=-1, keepdims=True)
    xn = (x - mean) * jax.lax.rsqrt(var + LN_EPS)
    xn = xn * g_ref[...].astype(jnp.float32) + b_ref[...].astype(jnp.float32)
    y = jnp.dot(xn.astype(w_ref.dtype), w_ref[...],
                preferred_element_type=jnp.float32)
    o_ref[...] = y.astype(o_ref.dtype)


# ---------------------------------------------------------------------------
# Kernel 2: multi-head attention, flash-style online softmax.
# grid = (B, head_blocks, q_tiles, kv_tiles); heads indexed via BlockSpec
# column blocks of the qkv array, `hpb` heads per grid step (128-lane dense).
# ---------------------------------------------------------------------------
def mha_kernel(q_ref, k_ref, v_ref, o_ref, m_sc, l_sc, acc_sc,
               *, hpb, dim_head, n_keys, kv_tile, mask_keys):
    ki = pl.program_id(3)

    @pl.when(ki == 0)
    def _init():
        m_sc[...] = jnp.full_like(m_sc, NEG_INF)
        l_sc[...] = jnp.zeros_like(l_sc)
        acc_sc[...] = jnp.zeros_like(acc_sc)

    key_ok = None
    if mask_keys:  # static: only when the seq dimension was padded
        key_idx = ki * kv_tile + jax.lax.broadcasted_iota(jnp.int32, (1, kv_tile), 1)
        key_ok = key_idx < n_keys

    for j in range(hpb):                       # static unroll over heads in block
        sl = slice(j * dim_head, (j + 1) * dim_head)
        # scores (TQ, TK) = q_j @ k_j^T (softmax scale pre-folded into W_q)
        s = jax.lax.dot_general(
            q_ref[:, sl], k_ref[:, sl], (((1,), (1,)), ((), ())),
            preferred_element_type=jnp.float32)
        if mask_keys:
            s = jnp.where(key_ok, s, NEG_INF)
        m_prev = m_sc[j]                       # (TQ, 1)
        m_new = jnp.maximum(m_prev, jnp.max(s, axis=-1, keepdims=True))
        alpha = jnp.exp(m_prev - m_new)
        p = jnp.exp(s - m_new)
        l_sc[j] = alpha * l_sc[j] + jnp.sum(p, axis=-1, keepdims=True)
        acc_sc[:, sl] = alpha * acc_sc[:, sl] + jnp.dot(
            p.astype(v_ref.dtype), v_ref[:, sl],
            preferred_element_type=jnp.float32)
        m_sc[j] = m_new

    @pl.when(ki == pl.num_programs(3) - 1)
    def _finalize():
        parts = []
        for j in range(hpb):
            sl = slice(j * dim_head, (j + 1) * dim_head)
            inv = pl.reciprocal(l_sc[j], approx=True)          # EUP slot
            parts.append(acc_sc[:, sl] * inv)
        out = parts[0] if hpb == 1 else jnp.concatenate(parts, axis=-1)
        o_ref[...] = out.astype(o_ref.dtype)   # single lane-dense store


# ---------------------------------------------------------------------------
# Kernel 3: output projection (no bias). grid = (B, seq_tiles)
# ---------------------------------------------------------------------------
def out_proj_kernel(a_ref, w_ref, o_ref):
    y = jnp.dot(a_ref[...].astype(w_ref.dtype), w_ref[...],
                preferred_element_type=jnp.float32)
    o_ref[...] = y.astype(o_ref.dtype)


def attention_forward(x, params, *, heads, dim_head):
    """x: (batch, seq, dim). Weights stored (in, out) so kernels compute x @ W."""
    B, N, D = x.shape
    inner = heads * dim_head
    dtype = x.dtype
    vmem_limit = _vmem_limit_bytes()

    # ---- tiling / padding (per-batch seq padding only; no transposes) ------
    n_pad = _round_up(N, 8) if N <= 512 else _round_up(N, 128)
    tq = _pick_tile(n_pad, 256)        # query tile
    tk = _pick_tile(n_pad, 512)        # kv tile (bigger: cheap VMEM, fewer steps)
    tseq = _pick_tile(n_pad, 512)      # row tile for the mem-bound projections
    hpb = _heads_per_block(heads, dim_head)
    HB = heads // hpb
    hd = hpb * dim_head                # lane-dense head-block width (>= 128)

    if n_pad != N:
        x = jnp.pad(x, ((0, 0), (0, n_pad - N), (0, 0)))

    # fold the softmax scale into the Q columns of w_qkv (weight-side == free)
    scale = jnp.asarray(dim_head ** -0.5, params["w_qkv"].dtype)
    w_qkv = jnp.concatenate(
        [params["w_qkv"][:, :inner] * scale, params["w_qkv"][:, inner:]], axis=-1)

    # ---- stage 1: LayerNorm + QKV projection --------------------------------
    # TODO(synk): for very large D / inner, add a column-tile grid axis so the
    # weight block need not be fully VMEM-resident (matters on v7x 64 MiB).
    qkv = pl.pallas_call(
        ln_qkv_kernel,
        out_shape=jax.ShapeDtypeStruct((B, n_pad, 3 * inner), dtype),
        grid_spec=pltpu.PrefetchScalarGridSpec(
            num_scalar_prefetch=0,
            grid=(B, n_pad // tseq),
            in_specs=[
                pl.BlockSpec((None, tseq, D), lambda b, s: (b, s, 0)),
                pl.BlockSpec((1, D), lambda b, s: (0, 0)),
                pl.BlockSpec((1, D), lambda b, s: (0, 0)),
                pl.BlockSpec((D, 3 * inner), lambda b, s: (0, 0)),
            ],
            out_specs=pl.BlockSpec((None, tseq, 3 * inner), lambda b, s: (b, s, 0)),
        ),
        compiler_params=pltpu.CompilerParams(
            dimension_semantics=("parallel", "parallel"),
            vmem_limit_bytes=vmem_limit),
    )(x, params["ln_g"], params["ln_b"], w_qkv)

    # ---- stage 2: attention; heads sliced straight out of qkv by BlockSpec --
    kernel = functools.partial(
        mha_kernel, hpb=hpb, dim_head=dim_head, n_keys=N, kv_tile=tk,
        mask_keys=(n_pad != N))

    attn_out = pl.pallas_call(
        kernel,
        out_shape=jax.ShapeDtypeStruct((B, n_pad, inner), dtype),
        grid_spec=pltpu.PrefetchScalarGridSpec(
            num_scalar_prefetch=0,
            grid=(B, HB, n_pad // tq, n_pad // tk),
            in_specs=[
                pl.BlockSpec((None, tq, hd), lambda b, h, qi, ki: (b, qi, h)),
                pl.BlockSpec((None, tk, hd), lambda b, h, qi, ki: (b, ki, HB + h)),
                pl.BlockSpec((None, tk, hd), lambda b, h, qi, ki: (b, ki, 2 * HB + h)),
            ],
            out_specs=pl.BlockSpec((None, tq, hd), lambda b, h, qi, ki: (b, qi, h)),
            scratch_shapes=[
                pltpu.VMEM((hpb, tq, 1), jnp.float32),   # per-head running max
                pltpu.VMEM((hpb, tq, 1), jnp.float32),   # per-head running denom
                pltpu.VMEM((tq, hd), jnp.float32),       # lane-dense f32 accumulator
            ],
        ),
        compiler_params=pltpu.CompilerParams(
            dimension_semantics=("parallel", "parallel", "parallel", "arbitrary"),
            vmem_limit_bytes=vmem_limit),
    )(qkv, qkv, qkv)

    # ---- stage 3: output projection ------------------------------------------
    y = pl.pallas_call(
        out_proj_kernel,
        out_shape=jax.ShapeDtypeStruct((B, n_pad, D), dtype),
        grid_spec=pltpu.PrefetchScalarGridSpec(
            num_scalar_prefetch=0,
            grid=(B, n_pad // tseq),
            in_specs=[
                pl.BlockSpec((None, tseq, inner), lambda b, s: (b, s, 0)),
                pl.BlockSpec((inner, D), lambda b, s: (0, 0)),
            ],
            out_specs=pl.BlockSpec((None, tseq, D), lambda b, s: (b, s, 0)),
        ),
        compiler_params=pltpu.CompilerParams(
            dimension_semantics=("parallel", "parallel"),
            vmem_limit_bytes=vmem_limit),
    )(attn_out, params["w_out"])

    return y[:, :N, :]


def init_params(key, dim, heads, dim_head, dtype=jnp.float32):
    inner = heads * dim_head
    k1, k2 = jax.random.split(key)
    lim_qkv = 1.0 / math.sqrt(dim)     # nn.Linear default uniform bound
    lim_out = 1.0 / math.sqrt(inner)
    return {
        "ln_g": jnp.ones((1, dim), dtype),
        "ln_b": jnp.zeros((1, dim), dtype),
        "w_qkv": jax.random.uniform(k1, (dim, 3 * inner), dtype, -lim_qkv, lim_qkv),
        "w_out": jax.random.uniform(k2, (inner, dim), dtype, -lim_out, lim_out),
    }


def attention_ref(x, params, heads, dim_head):
    """Pure-JAX reference matching the PyTorch module."""
    g, b = params["ln_g"][0], params["ln_b"][0]
    mu = jnp.mean(x, -1, keepdims=True)
    var = jnp.mean(jnp.square(x - mu), -1, keepdims=True)
    xn = (x - mu) / jnp.sqrt(var + LN_EPS) * g + b
    qkv = xn @ params["w_qkv"]
    q, k, v = jnp.split(qkv, 3, axis=-1)

    def split_heads(t):
        B, N, _ = t.shape
        return t.reshape(B, N, heads, dim_head).transpose(0, 2, 1, 3)

    q, k, v = map(split_heads, (q, k, v))
    dots = jnp.einsum("bhnd,bhmd->bhnm", q, k) * (dim_head ** -0.5)
    attn = jax.nn.softmax(dots, axis=-1)
    out = jnp.einsum("bhnm,bhmd->bhnd", attn, v)
    out = out.transpose(0, 2, 1, 3).reshape(x.shape[0], x.shape[1], heads * dim_head)
    return out @ params["w_out"]


if __name__ == "__main__":
    key = jax.random.PRNGKey(0)
    kx, kp = jax.random.split(key)

    batch, seq, dim = 2, 16, 64
    heads, dim_head = 4, 32            # inner_dim = 128, hpb = 4 (128-lane blocks)

    x = jax.random.normal(kx, (batch, seq, dim), jnp.float32)
    params = init_params(kp, dim, heads, dim_head, jnp.float32)

    y = attention_forward(x, params, heads=heads, dim_head=dim_head)
    y = jax.block_until_ready(y)
    assert y.shape == (batch, seq, dim), y.shape

    y_ref = attention_ref(x, params, heads, dim_head)
    err = float(jnp.max(jnp.abs(y - y_ref)))
    # tolerance accounts for the approx (EUP) reciprocal in the softmax denom
    assert err < 5e-3, err
    print("KERNEL_OK")
</pallas_src>

<mosaic_0001>
module attributes {stable_mosaic.version = 11 : i64} {
  func.func @ln_qkv_kernel(%arg0: i32, %arg1: i32, %arg2: memref<1x16x64xf32, #tpu.memory_space<vmem>>, %arg3: memref<1x64xf32, #tpu.memory_space<vmem>>, %arg4: memref<1x64xf32, #tpu.memory_space<vmem>>, %arg5: memref<64x384xf32, #tpu.memory_space<vmem>>, %arg6: memref<1x16x384xf32, #tpu.memory_space<vmem>>) attributes {dimension_semantics = [#tpu.dimension_semantics<parallel>, #tpu.dimension_semantics<parallel>], iteration_bounds = array<i64: 2, 1>, scalar_prefetch = 0 : i64, scratch_operands = 0 : i64, tpu.core_type = #tpu.core_type<tc>, window_params = [{transform_indices = @transform_0, window_bounds = array<i64: 1, 16, 64>}, {pipeline_mode = #tpu.pipeline_mode<synchronous>, transform_indices = @transform_1, window_bounds = array<i64: 1, 64>}, {pipeline_mode = #tpu.pipeline_mode<synchronous>, transform_indices = @transform_2, window_bounds = array<i64: 1, 64>}, {pipeline_mode = #tpu.pipeline_mode<synchronous>, transform_indices = @transform_3, window_bounds = array<i64: 64, 384>}, {transform_indices = @transform_4, window_bounds = array<i64: 1, 16, 384>}]} {
    %c0 = arith.constant 0 : index
    %c0_0 = arith.constant 0 : index
    %c0_1 = arith.constant 0 : index
    %0 = vector.load %arg2[%c0, %c0_0, %c0_1] : memref<1x16x64xf32, #tpu.memory_space<vmem>>, vector<1x16x64xf32>
    %1 = vector.shape_cast %0 : vector<1x16x64xf32> to vector<16x64xf32>
    %cst = arith.constant dense<0.000000e+00> : vector<16xf32>
    %2 = vector.multi_reduction <add>, %1, %cst [1] : vector<16x64xf32> to vector<16xf32>
    %3 = vector.shape_cast %2 : vector<16xf32> to vector<16x1xf32>
    %cst_2 = arith.constant 6.400000e+01 : f32
    %4 = vector.broadcast %cst_2 : f32 to vector<16x1xf32>
    %5 = arith.divf %3, %4 : vector<16x1xf32>
    %6 = vector.broadcast %5 : vector<16x1xf32> to vector<16x64xf32>
    %7 = arith.subf %1, %6 : vector<16x64xf32>
    %8 = arith.mulf %7, %7 : vector<16x64xf32>
    %cst_3 = arith.constant dense<0.000000e+00> : vector<16xf32>
    %9 = vector.multi_reduction <add>, %8, %cst_3 [1] : vector<16x64xf32> to vector<16xf32>
    %10 = vector.shape_cast %9 : vector<16xf32> to vector<16x1xf32>
    %cst_4 = arith.constant 6.400000e+01 : f32
    %11 = vector.broadcast %cst_4 : f32 to vector<16x1xf32>
    %12 = arith.divf %10, %11 : vector<16x1xf32>
    %13 = vector.broadcast %5 : vector<16x1xf32> to vector<16x64xf32>
    %14 = arith.subf %1, %13 : vector<16x64xf32>
    %cst_5 = arith.constant 9.99999974E-6 : f32
    %15 = vector.broadcast %cst_5 : f32 to vector<16x1xf32>
    %16 = arith.addf %12, %15 : vector<16x1xf32>
    %17 = math.rsqrt %16 : vector<16x1xf32>
    %18 = vector.broadcast %17 : vector<16x1xf32> to vector<16x64xf32>
    %19 = arith.mulf %14, %18 : vector<16x64xf32>
    %c0_6 = arith.constant 0 : index
    %c0_7 = arith.constant 0 : index
    %20 = vector.load %arg3[%c0_6, %c0_7] : memref<1x64xf32, #tpu.memory_space<vmem>>, vector<1x64xf32>
    %21 = vector.broadcast %20 : vector<1x64xf32> to vector<16x64xf32>
    %22 = arith.mulf %19, %21 : vector<16x64xf32>
    %c0_8 = arith.constant 0 : index
    %c0_9 = arith.constant 0 : index
    %23 = vector.load %arg4[%c0_8, %c0_9] : memref<1x64xf32, #tpu.memory_space<vmem>>, vector<1x64xf32>
    %24 = vector.broadcast %23 : vector<1x64xf32> to vector<16x64xf32>
    %25 = arith.addf %22, %24 : vector<16x64xf32>
    %c0_10 = arith.constant 0 : index
    %c0_11 = arith.constant 0 : index
    %26 = vector.load %arg5[%c0_10, %c0_11] : memref<64x384xf32, #tpu.memory_space<vmem>>, vector<64x384xf32>
    %cst_12 = arith.constant dense<0.000000e+00> : vector<16x384xf32>
    %27 = tpu.matmul %25, %26, %cst_12 {dimension_numbers = #tpu.dot_dimension_numbers<[1], [0], [0], [1], [0, 0, 1, 1], [], []>} : vector<16x64xf32>, vector<64x384xf32>, vector<16x384xf32> -> vector<16x384xf32>
    %c0_13 = arith.constant 0 : index
    %c0_14 = arith.constant 0 : index
    %c0_15 = arith.constant 0 : index
    %28 = vector.load %arg6[%c0_13, %c0_14, %c0_15] : memref<1x16x384xf32, #tpu.memory_space<vmem>>, vector<1x16x384xf32>
    %29 = vector.shape_cast %28 : vector<1x16x384xf32> to vector<16x384xf32>
    %30 = vector.shape_cast %27 : vector<16x384xf32> to vector<1x16x384xf32>
    tpu.vector_store %arg6[%c0_13, %c0_14, %c0_15], %30 {strides = array<i32>} : memref<1x16x384xf32, #tpu.memory_space<vmem>>, vector<1x16x384xf32>,
    return
  }
  func.func @transform_0(%arg0: i32, %arg1: i32) -> (i32, i32, i32) {
    %c0_i32 = arith.constant 0 : i32
    %c0_i32_0 = arith.constant 0 : i32
    return %arg0, %arg1, %c0_i32 : i32, i32, i32
  }
  func.func @transform_1(%arg0: i32, %arg1: i32) -> (i32, i32) {
    %c0_i32 = arith.constant 0 : i32
    %c0_i32_0 = arith.constant 0 : i32
    %c0_i32_1 = arith.constant 0 : i32
    return %c0_i32, %c0_i32_0 : i32, i32
  }
  func.func @transform_2(%arg0: i32, %arg1: i32) -> (i32, i32) {
    %c0_i32 = arith.constant 0 : i32
    %c0_i32_0 = arith.constant 0 : i32
    %c0_i32_1 = arith.constant 0 : i32
    return %c0_i32, %c0_i32_0 : i32, i32
  }
  func.func @transform_3(%arg0: i32, %arg1: i32) -> (i32, i32) {
    %c0_i32 = arith.constant 0 : i32
    %c0_i32_0 = arith.constant 0 : i32
    %c0_i32_1 = arith.constant 0 : i32
    return %c0_i32, %c0_i32_0 : i32, i32
  }
  func.func @transform_4(%arg0: i32, %arg1: i32) -> (i32, i32, i32) {
    %c0_i32 = arith.constant 0 : i32
    %c0_i32_0 = arith.constant 0 : i32
    return %arg0, %arg1, %c0_i32 : i32, i32, i32
  }
}

</mosaic_0001>

<bundles_post_ra>
// kernel: tpu_custom_call.1
= control target key start
LH: loop header
LB: loop body
LE: loop exit
PB: predicated region body
PF: predicated region fallthrough
CT: control target
= control target key end

     0   :  { %s1092_s0 = inlined_call_operand.hbm [shape: f32[2,16,64], index: 0, kind: input, shape index: {}]   ;;  %s1093_s1 = inlined_call_operand.hbm [shape: f32[1,64], index: 1, kind: input, shape index: {}]   ;;  %s1094_s2 = inlined_call_operand.vmem [shape: f32[1,64], index: 2, kind: input, shape index: {}]   ;;  %s1095_s3 = inlined_call_operand.hbm [shape: f32[64,384], index: 3, kind: input, shape index: {}]   ;;  %s1096_s4 = inlined_call_operand.hbm [shape: f32[2,16,384], index: 4, kind: output, shape index: {}]  }
   0x1   :  { %1097 = sst [smem:[#allocation12_spill]] %s1093_s1 }
   0x2   :  { %1098 = sst [smem:[#allocation13_spill]] %s1095_s3 }
   0x3   :  { %9 = vsyncpa [#allocation3], 0 }
   0x4   :  { %11 = vsyncpa [#allocation3 + $0x1], 0 }
   0x5   :  { %12 = vsyncpa [#allocation6], 0 }
   0x6   :  { %13 = vsyncpa [#allocation4], 0 }
   0x7   :  { %15 = vsyncpa [#allocation4 + $0x1], 0  ;;  %s908_s15 = smov 0   ;;  %s910_s16 = smov 0  }
   0x8   :  { %s912_s17 = smov 0   ;;  %s914_s18 = smov 0  }
   0x9   :  { %s916_s19 = smov 0   ;;  %s918_s20 = smov 0  }
   0xa LB: > { %s565_s21 = sadd.s32 4294967295, %s872_s20   ;;  %s566_s22 = sadd.s32 4294967294, %s872_s20   ;;  %s872_s20 = sphi %s918_s20, %s21_s20   ;;  %s868_s19 = sphi %s916_s19, %s1113_s19   ;;  %s864_s18 = sphi %s914_s18, %s1112_s18   ;;  %s860_s17 = sphi %s912_s17, %s1111_s17   ;;  %s856_s16 = sphi %s910_s16, %s1110_s16   ;;  %s852_s15 = sphi %s908_s15, %s1109_s15  }
   0xb   : > { %p49_p0 = scmp.ne.s32.totalorder %s860_s17, %s856_s16  ;;  %p50_p1 = scmp.eq.s32.totalorder %s872_s20, 0 }
   0xc   : > { %p55_p2 = scmp.ne.s32.totalorder %s856_s16, %s852_s15  ;;  %p946_p3 = scmp.eq.s32.totalorder %s565_s21, 0 }
   0xd   : > { %p144_p4 = scmp.eq.s32.totalorder %s565_s21, 1  ;;  %p950_p5 = por %p50_p1, %p49_p0 }
   0xe   : > { %p150_p6 = scmp.eq.s32.totalorder %s566_s22, 1  ;;  %p956_p7 = por %p946_p3, %p55_p2 }
   0xf   : > { %p960_p8 = por %p144_p4, %p49_p0  ;;  %p567_p10 = scmp.ge.s32.totalorder %s872_s20, 1 }
  0x10   : > { %p964_p9 = por %p150_p6, %p55_p2  ;;  %p157_p11 = scmp.lt.s32.totalorder %s872_s20, 3 }
  0x11   : > { %s1104_s1 = sld [smem:[#allocation12_spill]]  ;;  %s874_s7 = smov [#allocation5]  }
  0x12   : > { %p973_p12 = pnand %p567_p10, %p157_p11  ;;  %s171_s8 = sshll.u32 %s874_s7, 4  ;;  %s172_s8 = int_to_ptr.vmem [resolvable:$true] %s171_s8 }
  0x13   : > { %p570_p13 = scmp.ge.s32.totalorder %s872_s20, 2  ;;  %p627_p1 = scmp.lt.s32.totalorder %s872_s20, 2 }
  0x14   : > { %p610_p0 = pneg %p973_p12  ;;  %s1106_s3 = sld [smem:[#allocation13_spill]] }
  0x15   : > { %p988_p4 = pnand %p627_p1, %p950_p5  ;;  %s875_s13 = smov [#allocation7]  }
  0x16   : > { %p611_p2 = pnand %p610_p0, %p946_p3  ;;  %s185_s14 = sshll.u32 %s875_s13, 4  ;;  %s186_s14 = int_to_ptr.vmem [resolvable:$true] %s185_s14 }
  0x17   : > { %s169_s5 = sshll.u32 %s1104_s1, 4  ;;  %s876_s21 = smov 384   ;;  %s170_s5 = int_to_ptr.hbm [resolvable:$true] %s169_s5 }
  0x18   : > { %613 = dma.hbm_to_vmem [thread:$0]  (!%p611_p2), %s170_s5, 16, %s172_s8, [#allocation6]  }
  0x19   : > { %s877_s22 = smov 24   ;;  %s199_s29 = sand.u32 1, %s860_s17  }
  0x1a   : > { %s183_s11 = sshll.u32 %s1106_s3, 4  ;;  %s33_s30 = sadd.s32 1, %s868_s19  ;;  %s184_s11 = int_to_ptr.hbm [resolvable:$true] %s183_s11 }
  0x1b   : > { %616 = dma.hbm_to_vmem [thread:$0]  (!%p611_p2), %s184_s11, 3072, %s186_s14, [#allocation6], %s876_s21, %s876_s21, %s877_s22  }
  0x1c   : > { %s571_s7 = sshll.u32 %s199_s29, 4  ;;  %p35_p6 = scmp.ge.s32.totalorder %s33_s30, 2 }
  0x1d   : > { %s587_s25 = sshll.u32 %s868_s19, 4  ;;  %s203_s9 = scalar_lea.vmem [#allocation2], %s571_s7 }
  0x1e   : > { %s213_s10 = sshll.u32 %s203_s9, 4  ;;  %s1115_s30 = smov (%p35_p6, %s33_s30), 0  ;;  %s214_s10 = int_to_ptr.vmem [resolvable:$true] %s213_s10 }
  0x1f   : > { %s210_s5 = scalar_lea.hbm %s1092_s0, %s587_s25  ;;  %s37_s8 = ssub.s32 %s868_s19, %s1115_s30 }
  0x20   : > { %s211_s1 = sshll.u32 %s210_s5, 4  ;;  %p40_p5 = scmp.eq.s32.totalorder %s37_s8, 0  ;;  %s212_s1 = int_to_ptr.hbm [resolvable:$true] %s211_s1 }
  0x21   : > { %s1108_s11 = sadd.s32 1, %s860_s17  ;;  %s200_s21 = scalar_lea.sflag [#allocation3], %s199_s29 }
  0x22   : > { %s1005_s14 = scalar_select %p40_p5, %s860_s17, %s1108_s11  }
  0x23   : > { %s878_s22 = smov 128   ;;  %s879_s3 = smov 8  }
  0x24   : > { %620 = dma.hbm_to_vmem [thread:$0]  (!%p988_p4), %s212_s1, 256, %s214_s10, %s200_s21, %s878_s22, %s878_s22, %s879_s3  }
  0x25   : > { %225 = sbr.rel (%p973_p12) target bundleno = 459 (0x1cb), region = 36  ;;  %s1012_s23 = sand.u32 (!%p973_p12), 1, %s856_s16  }
  0x26   : > { %s575_s7 = sshll.u32 (!%p973_p12), %s1012_s23, 4  ;;  %s228_s25 = scalar_lea.sflag (!%p973_p12), [#allocation3], %s1012_s23 }
  0x27   : > { %s231_s9 = scalar_lea.vmem (!%p973_p12), [#allocation2], %s575_s7 }
  0x2a   : > { %839 = dma.done.wait (%p956_p7), %s228_s25, 256  }
  0x2b   : > { %841 = vsyncadd (%p956_p7), %s228_s25, 4294967040 }
  0x2c   : > { %843 = dma.done.wait (%p946_p3), [#allocation6], 3088  }
  0x2d   : > { %845 = vsyncadd (%p946_p3), [#allocation6], 4294964208  ;;  %vm271_vm0 = vcmask 523264   ;;  %v269_v0 = vld [vmem:[%s231_s9] sm:$0xff]  ;;  %v270_v2 = vld [vmem:[%s231_s9 + $0x8] sm:$0xff]  ;;  %v880_v4 = vmov 64.0  }
  0x2e   : > { %v272_v1 = vsel %vm271_vm0, %v269_v0, 0.0  ;;  %v275_v3 = vsel %vm271_vm0, %v270_v2, 0.0  ;;  %690 = vrcp.f32 %v880_v4  ;;  %v356_v21 = vld [vmem:[#allocation7 + $0xa8] sm:$0xff]  ;;  %v357_v22 = vld [vmem:[#allocation7 + $0xb0] sm:$0xff]  ;;  %v358_v23 = vld [vmem:[#allocation7 + $0xb8] sm:$0xff]  ;;  %s596_s24 = smul.u32 48, %s1012_s23 }
  0x2f   : > { %273 = vadd.xlane.f32.xlu0 %v272_v1  ;;  %373 = vmatpush.msra.mxu0 %v356_v21  ;;  %v353_v24 = vld [vmem:[#allocation7 + $0x90] sm:$0xff]  ;;  %v354_v25 = vld [vmem:[#allocation7 + $0x98] sm:$0xff]  ;;  %v355_v26 = vld [vmem:[#allocation7 + $0xa0] sm:$0xff]  ;;  %s597_s6 = smul.u32 48, %s864_s18  ;;  %s441_s8 = scalar_lea.sflag [#allocation4], %s1012_s23 }
  0x30   : > { %396 = vmatpush.msra.mxu1 %v357_v22  ;;  %419 = vmatpush.msra.mxu2 %v358_v23  ;;  %v350_v27 = vld [vmem:[#allocation7 + $0x78] sm:$0xff]  ;;  %v351_v28 = vld [vmem:[#allocation7 + $0x80] sm:$0xff]  ;;  %v352_v29 = vld [vmem:[#allocation7 + $0x88] sm:$0xff]  ;;  %s266_s26 = scalar_lea.vmem [#allocation8], %s596_s24  ;;  %s806_s7 = scalar_lea.hbm %s1096_s4, 96 }
  0x31   : > { %588 = vmatpush.msra.mxu3 %v356_v21  ;;  %374 = vmatpush.msra.mxu0 %v353_v24  ;;  %v347_v30 = vld [vmem:[#allocation7 + $0x60] sm:$0xff]  ;;  %v348_v31 = vld [vmem:[#allocation7 + $0x68] sm:$0xff]  ;;  %v349_v32 = vld [vmem:[#allocation7 + $0x70] sm:$0xff]  ;;  %s455_s10 = scalar_lea.hbm %s1096_s4, %s597_s6  ;;  %s456_s13 = sshll.u32 %s266_s26, 4  ;;  %s457_s13 = int_to_ptr.vmem [resolvable:$true] %s456_s13 }
  0x32   : > { %397 = vmatpush.msra.mxu1 %v354_v25  ;;  %420 = vmatpush.msra.mxu2 %v355_v26  ;;  %v344_v33 = vld [vmem:[#allocation7 + $0x48] sm:$0xff]  ;;  %v345_v34 = vld [vmem:[#allocation7 + $0x50] sm:$0xff]  ;;  %v346_v35 = vld [vmem:[#allocation7 + $0x58] sm:$0xff]  ;;  %s458_s5 = sshll.u32 %s455_s10, 4  ;;  %s459_s5 = int_to_ptr.hbm [resolvable:$true] %s458_s5 }
  0x33   : > { %589 = vmatpush.msra.mxu3 %v353_v24  ;;  %375 = vmatpush.msra.mxu0 %v350_v27  ;;  %v341_v36 = vld [vmem:[#allocation7 + $0x30] sm:$0xff]  ;;  %v342_v37 = vld [vmem:[#allocation7 + $0x38] sm:$0xff]  ;;  %v343_v38 = vld [vmem:[#allocation7 + $0x40] sm:$0xff]  ;;  %s800_s11 = sshra.s32 %s459_s5, 4  ;;  %s801_s11 = int_to_ptr.hbm [resolvable:$true] %s800_s11 }
  0x34   : > { %v691_v5 = vpop.eup %690  ;;  %398 = vmatpush.msra.mxu1 %v351_v28  ;;  %421 = vmatpush.msra.mxu2 %v352_v29  ;;  %v338_v39 = vld [vmem:[#allocation7 + $0x18] sm:$0xff]  ;;  %v339_v40 = vld [vmem:[#allocation7 + $0x20] sm:$0xff]  ;;  %v340_v41 = vld [vmem:[#allocation7 + $0x28] sm:$0xff]  ;;  %s802_s18 = scalar_lea.hbm %s801_s11, 48  ;;  %p807_p11 = scmp.lt.s32.totalorder %s801_s11, %s1096_s4 }
  0x35   : > { %v279_v6 = vmul.f32 64.0, %v691_v5  ;;  %vm283_vm1 = vweird.f32 %v691_v5  ;;  %590 = vmatpush.msra.mxu3 %v350_v27  ;;  %376 = vmatpush.msra.mxu0 %v347_v30  ;;  %v335_v42 = vld [vmem:[#allocation7] sm:$0xff]  ;;  %v336_v43 = vld [vmem:[#allocation7 + $0x8] sm:$0xff]  ;;  %v337_v44 = vld [vmem:[#allocation7 + $0x10] sm:$0xff]  ;;  %p803_p3 = scmp.ne.s32.totalorder %s801_s11, %s802_s18  ;;  %p808_p12 = scmp.lt.s32.totalorder %s806_s7, %s802_s18 }
  0x36   : > { %399 = vmatpush.msra.mxu1 %v348_v31  ;;  %422 = vmatpush.msra.mxu2 %v349_v32  ;;  %v688_v59 = vld [vmem:[#allocation5] ss:$0 sm:$0xff] }
  0x37   : > { %276 = vadd.xlane.f32.xlu0 %v275_v3  ;;  %v280_v7 = vsub.f32 1.0, %v279_v6  ;;  %591 = vmatpush.msra.mxu3 %v347_v30  ;;  %v689_v63 = vld [vmem:[%s1094_s2] ss:$0 sm:$0xff]  ;;  %p804_p7 = pnand %p803_p3, %p960_p8  ;;  %p809_p0 = por %p808_p12, %p807_p11 }
  0x38   : > { %377 = vmatpush.msra.mxu0 %v344_v33  ;;  %400 = vmatpush.msra.mxu1 %v345_v34 }
  0x39   : > { %v281_v8 = vmul.f32 %v691_v5, %v280_v7  ;;  %423 = vmatpush.msra.mxu2 %v346_v35  ;;  %592 = vmatpush.msra.mxu3 %v344_v33  ;;  %p805_p10 = pneg %p804_p7 }
  0x3a   : > { %378 = vmatpush.msra.mxu0 %v341_v36  ;;  %401 = vmatpush.msra.mxu1 %v342_v37 }
  0x3b   : > { %v282_v9 = vadd.f32 %v691_v5, %v281_v8  ;;  %424 = vmatpush.msra.mxu2 %v343_v38  ;;  %593 = vmatpush.msra.mxu3 %v341_v36  ;;  %p810_p1 = pnand %p809_p0, %p805_p10 }
  0x3c   : > { %379 = vmatpush.msra.mxu0 %v338_v39  ;;  %402 = vmatpush.msra.mxu1 %v339_v40 }
  0x3d   : > { %v1026_v10 = vsel %vm283_vm1, %v691_v5, %v282_v9  ;;  %425 = vmatpush.msra.mxu2 %v340_v41  ;;  %594 = vmatpush.msra.mxu3 %v338_v39 }
  0x3e   : > { %380 = vmatpush.msra.mxu0 %v335_v42  ;;  %403 = vmatpush.msra.mxu1 %v336_v43 }
  0x3f   : > { %426 = vmatpush.msra.mxu2 %v337_v44  ;;  %595 = vmatpush.msra.mxu3 %v335_v42 }
  0xa2   : > { %v274_v11 = vpop.xlane.xlu0 %273 }
  0xa3   : > { %v285_v12 = vmul.f32 %v1026_v10, %v274_v11 }
  0xa5   : > { %v1029_v13 = vsub.f32 %v269_v0, %v285_v12 }
  0xa7   : > { %v289_v14 = vmul.f32 %v1029_v13, %v1029_v13 }
  0xa9   : > { %v291_v15 = vsel %vm271_vm0, %v289_v14, 0.0 }
  0xaa   : > { %292 = vadd.xlane.f32.xlu1 %v291_v15  ;;  %v277_v16 = vpop.xlane.xlu0 %276 }
  0xab   : > { %v286_v17 = vmul.f32 %v1026_v10, %v277_v16 }
  0xad   : > { %v1035_v18 = vsub.f32 %v270_v2, %v286_v17 }
  0xaf   : > { %v290_v19 = vmul.f32 %v1035_v18, %v1035_v18 }
  0xb1   : > { %v294_v20 = vsel %vm271_vm0, %v290_v19, 0.0 }
  0xb2   : > { %295 = vadd.xlane.f32.xlu1 %v294_v20 }
 0x11d   : > { %v293_v45 = vpop.xlane.xlu1 %292 }
 0x11e   : > { %v297_v46 = vmul.f32 %v293_v45, %v1026_v10 }
 0x120   : > { %v299_v47 = vadd.f32 1e-05, %v297_v46 }
 0x122   : > { %692 = vrsqrt.f32 %v299_v47  ;;  %vm307_vm3 = vweird.f32 %v299_v47 }
 0x125   : > { %v296_v48 = vpop.xlane.xlu1 %295 }
 0x126   : > { %v298_v49 = vmul.f32 %v296_v48, %v1026_v10 }
 0x128   : > { %v693_v50 = vpop.eup %692  ;;  %v300_v51 = vadd.f32 1e-05, %v298_v49 }
 0x129   : > { %v302_v52 = vmul.f32 %v693_v50, %v299_v47  ;;  %vm308_vm2 = vweird.f32 %v693_v50 }
 0x12a   : > { %694 = vrsqrt.f32 %v300_v51  ;;  %vm309_vm4 = vmor %vm307_vm3, %vm308_vm2  ;;  %vm317_vm6 = vweird.f32 %v300_v51 }
 0x12b   : > { %v303_v53 = vmul.f32 %v693_v50, %v302_v52 }
 0x12d   : > { %v304_v54 = vmul.f32 0.5, %v303_v53 }
 0x12f   : > { %v305_v55 = vsub.f32 1.5, %v304_v54 }
 0x130   : > { %v695_v56 = vpop.eup %694 }
 0x131   : > { %v306_v57 = vmul.f32 %v693_v50, %v305_v55  ;;  %v312_v58 = vmul.f32 %v695_v56, %v300_v51  ;;  %vm318_vm5 = vweird.f32 %v695_v56 }
 0x132   : > { %vm319_vm7 = vmor %vm317_vm6, %vm318_vm5 }
 0x133   : > { %v310_v60 = vsel %vm309_vm4, %v693_v50, %v306_v57  ;;  %v313_v61 = vmul.f32 %v695_v56, %v312_v58 }
 0x134   : > { %v321_v62 = vmul.f32 %v310_v60, %v1029_v13 }
 0x135   : > { %v314_v0 = vmul.f32 0.5, %v313_v61 }
 0x136   : > { %v327_v1 = vmul.f32 %v688_v59, %v321_v62 }
 0x137   : > { %v315_v2 = vsub.f32 1.5, %v314_v0 }
 0x138   : > { %v333_v3 = vadd.f32 %v689_v63, %v327_v1 }
 0x139   : > { %v316_v4 = vmul.f32 %v695_v56, %v315_v2 }
 0x13a   : > { %578 = vmatmul.msk.f32.vlgmr.msra.gmra.mxu0 %vm271_vm0, %v333_v3  ;;  %580 = vmatmul.msk.f32.vlgmr.msra.gmra.mxu1 %vm271_vm0, %v333_v3 }
 0x13b   : > { %v320_v5 = vsel %vm319_vm7, %v695_v56, %v316_v4  ;;  %582 = vmatmul.msk.f32.vlgmr.msra.gmra.mxu2 %vm271_vm0, %v333_v3 }
 0x13c   : > { %v322_v6 = vmul.f32 %v320_v5, %v1035_v18 }
 0x13e   : > { %v328_v7 = vmul.f32 %v688_v59, %v322_v6 }
 0x140   : > { %v334_v8 = vadd.f32 %v689_v63, %v328_v7 }
 0x142   : > { %579 = vmatmul.msk.f32.vlgmr.msra.gmra.mxu3 %vm271_vm0, %v334_v8  ;;  %581 = vmatmul.msk.f32.gmra.mxu1 %vm271_vm0, %v334_v8 }
 0x143   : > { %583 = vmatmul.msk.f32.gmra.mxu2 %vm271_vm0, %v334_v8 }
 0x1b7   : > { %v382_v9 = vpop.f32.mrf.mxu0  ;;  %v405_v10 = vpop.f32.mrf.mxu1 }
 0x1b8   : > { %434 = vst [vmem:[%s266_s26] sm:$0xff] %v382_v9 }
 0x1b9   : > { %435 = vst [vmem:[%s266_s26 + $0x8] sm:$0xff] %v405_v10 }
 0x1be   : > { %v428_v11 = vpop.f32.mrf.mxu2 }
 0x1bf   : > { %436 = vst [vmem:[%s266_s26 + $0x10] sm:$0xff] %v428_v11  ;;  %v408_v12 = vpop.f32.mrf.mxu1 }
 0x1c0   : > { %438 = vst [vmem:[%s266_s26 + $0x20] sm:$0xff] %v408_v12 }
 0x1c5   : > { %v385_v13 = vpop.f32.mrf.mxu3 }
 0x1c6   : > { %437 = vst [vmem:[%s266_s26 + $0x18] sm:$0xff] %v385_v13  ;;  %v431_v14 = vpop.f32.mrf.mxu2 }
 0x1c7   : > { %439 = vst [vmem:[%s266_s26 + $0x28] sm:$0xff] %v431_v14 }
 0x1c8   : > { %813 = shalt.err (!%p810_p1)
}
 0x1c9   : > { %s881_s23 = smov 384   ;;  %s882_s1 = smov 24  }
 0x1ca   : > { %608 = dma.vmem_to_hbm [thread:$0]  (%p960_p8), %s457_s13, 768, %s459_s5, %s441_s8, %s881_s23, %s881_s23, %s882_s1  }
 0x1cb PF: > { %s473_s3 = sand.u32 1, %s852_s15   ;;  %p622_p2 = pnand %p570_p13, %p964_p9 }
 0x1cc   : > { %s474_s24 = scalar_lea.sflag [#allocation4], %s473_s3 }
 0x1cd   : > { %p623_p4 = pneg %p622_p2 }
 0x1cf   : > { %847 = dma.done.wait (%p623_p4), %s474_s24, 768  }
 0x1d0   : > { %849 = vsyncadd (%p623_p4), %s474_s24, 4294966528  ;;  %s21_s20 = sadd.s32 1, %s872_s20   ;;  %s1109_s15 = smov %s856_s16 }
 0x1d1   : > { %p18_p6 = scmp.ge.s32.totalorder %s21_s20, 4   ;;  %s1110_s16 = smov %s860_s17 }
 0x1d2   : > { %s1111_s17 = smov %s1005_s14  ;;  %s1112_s18 = smov %s868_s19 }
 0x1d3   : > { %s1113_s19 = smov %s1115_s30  ;;  %20 = sbr.rel (!%p18_p6) target bundleno = 10 (0xa), region = 89 }
 0x1d8   :  { %480 = vsyncpa [#allocation3], 1 }
 0x1d9   :  { %482 = vsyncpa [#allocation3 + $0x1], 1 }
 0x1da   :  { %483 = vsyncpa [#allocation6], 1 }
 0x1db   :  { %484 = vsyncpa [#allocation4], 1 }
 0x1dc   :  { %486 = vsyncpa [#allocation4 + $0x1], 1 }

</bundles_post_ra>
